<compile_context>
chip_gen: v5e
topology: v5e:2x2
jax: 0.10.0
libtpu: 0.0.40
codegen_flags: <defaults>
</compile_context>

<pallas_src>
import jax
import jax.numpy as jnp
from jax.experimental import pallas as pl
from jax.experimental.pallas import tpu as pltpu


def _copy_kernel(x_ref, o_ref):
    # Byte-identical tile copy: element (b, s, h, d) of the output is element
    # (b, s, h*D + d) of the contiguous input, i.e. a straight copy.
    o_ref[...] = x_ref[...]


def _pick_row_block(rows, feat, itemsize, vmem_budget_bytes):
    """Largest sublane-aligned row tile whose double-buffered in+out blocks fit VMEM."""
    sub = max(8, 32 // itemsize)          # 8 for f32, 16 for bf16, 32 for int8
    bytes_per_row = feat * itemsize
    # 2 pipeline buffers for the input block + 2 for the output block = 4x.
    cap = max(sub, (vmem_budget_bytes // (4 * bytes_per_row)) // sub * sub)
    if rows <= cap:
        return rows                        # full extent is always a legal block
    rb = (cap // sub) * sub
    while rb >= sub:
        if rows % rb == 0:
            return rb
        rb -= sub
    return rows                            # fallback: single full-slab block


def view_as_heads(x, num_heads, head_dim, *, row_block=None,
                  vmem_budget_bytes=24 * 1024 * 1024):
    """Equivalent of x.view(B, S, num_heads, head_dim) for x of shape (B, S, E)."""
    B, S, E = x.shape
    assert E == num_heads * head_dim, "hidden dim must equal heads * head_dim"

    # In production the whole function would simply be:
    #   return jnp.reshape(x, (B, S, num_heads, head_dim))
    # The Pallas copy below is kept as the kernelized data-movement path.

    rows = B * S
    itemsize = jnp.dtype(x.dtype).itemsize
    if row_block is None:
        row_block = _pick_row_block(rows, E, itemsize, vmem_budget_bytes)
    assert rows % row_block == 0 or row_block == rows

    x2d = jnp.reshape(x, (rows, E))        # metadata-only flatten (lane-dense)

    flat = pl.pallas_call(
        _copy_kernel,
        out_shape=jax.ShapeDtypeStruct((rows, E), x.dtype),
        grid=(rows // row_block,),
        in_specs=[pl.BlockSpec((row_block, E), lambda i: (i, 0))],
        out_specs=pl.BlockSpec((row_block, E), lambda i: (i, 0)),
        input_output_aliases={0: 0},       # no second HBM buffer for identical bytes
        compiler_params=pltpu.CompilerParams(
            dimension_semantics=("parallel",),     # shards rows across TCs on v7x
            vmem_limit_bytes=32 * 1024 * 1024,
        ),
    )(x2d)

    # Metadata-only reshape (the torch .view itself) — free in XLA.
    return jnp.reshape(flat, (B, S, num_heads, head_dim))


if __name__ == "__main__":
    # Small shapes consistent with the module's forward:
    # real shape was (1, 384, 768) -> (1, 384, 12, 64); here (1, 8, 32) -> (1, 8, 4, 8).
    B, S, E = 1, 8, 32
    H, D = 4, 8

    key = jax.random.PRNGKey(0)
    x143 = jax.random.normal(key, (B, S, E), dtype=jnp.float32)
    x156 = (B, S, H, D)

    out = view_as_heads(x143, H, D)
    out = jax.block_until_ready(out)

    # Sanity check against the pure-JAX reference of torch's .view semantics.
    ref = jnp.reshape(x143, x156)
    assert out.shape == x156
    assert out.dtype == x143.dtype
    assert bool(jnp.all(out == ref))

    print("KERNEL_OK")
</pallas_src>

<mosaic_0001>
module attributes {stable_mosaic.version = 11 : i64} {
  func.func @_copy_kernel(%arg0: i32, %arg1: memref<8x32xf32, #tpu.memory_space<vmem>>, %arg2: memref<8x32xf32, #tpu.memory_space<vmem>>) attributes {dimension_semantics = [#tpu.dimension_semantics<parallel>], iteration_bounds = array<i64: 1>, scalar_prefetch = 0 : i64, scratch_operands = 0 : i64, tpu.core_type = #tpu.core_type<tc>, window_params = [{transform_indices = @transform_0, window_bounds = array<i64: 8, 32>}, {transform_indices = @transform_1, window_bounds = array<i64: 8, 32>}]} {
    %c0 = arith.constant 0 : index
    %c0_0 = arith.constant 0 : index
    %0 = vector.load %arg1[%c0, %c0_0] : memref<8x32xf32, #tpu.memory_space<vmem>>, vector<8x32xf32>
    %c0_1 = arith.constant 0 : index
    %c0_2 = arith.constant 0 : index
    %1 = vector.load %arg2[%c0_1, %c0_2] : memref<8x32xf32, #tpu.memory_space<vmem>>, vector<8x32xf32>
    tpu.vector_store %arg2[%c0_1, %c0_2], %0 {strides = array<i32>} : memref<8x32xf32, #tpu.memory_space<vmem>>, vector<8x32xf32>,
    return
  }
  func.func @transform_0(%arg0: i32) -> (i32, i32) {
    %c0_i32 = arith.constant 0 : i32
    %c0_i32_0 = arith.constant 0 : i32
    return %arg0, %c0_i32 : i32, i32
  }
  func.func @transform_1(%arg0: i32) -> (i32, i32) {
    %c0_i32 = arith.constant 0 : i32
    %c0_i32_0 = arith.constant 0 : i32
    return %arg0, %c0_i32 : i32, i32
  }
}

</mosaic_0001>

<bundles_post_ra>
// kernel: tpu_custom_call.1
= control target key start
LH: loop header
LB: loop body
LE: loop exit
PB: predicated region body
PF: predicated region fallthrough
CT: control target
= control target key end

     0   :  { %6 = vsyncpa [#allocation3], 0  ;;  %s115_s0 = inlined_call_operand.hbm [shape: f32[8,32], index: 0, kind: input, shape index: {}, may-alias: {0,1}]   ;;  %s116_s1 = inlined_call_operand.hbm [shape: f32[8,32], index: 1, kind: output, shape index: {}, may-alias: {0,1}]  }
   0x1   :  { %7 = vsyncpa [#allocation4], 0  ;;  %s13_s8 = sshll.u32 %s115_s0, 4  ;;  %s97_s9 = smov [#allocation2]   ;;  %s14_s8 = int_to_ptr.hbm [resolvable:$true] %s13_s8 }
   0x2   :  { %s15_s10 = sshll.u32 %s97_s9, 4  ;;  %s16_s10 = int_to_ptr.vmem [resolvable:$true] %s15_s10 }
   0x3   :  { %18 = dma.hbm_to_vmem [thread:$0]  %s14_s8, 128, %s16_s10, [#allocation3]  }
   0x4   :  { %93 = dma.done.wait [#allocation3], 128  }
   0x5   :  { %94 = vsyncadd [#allocation3], 4294967168  ;;  %s98_s11 = smov [#allocation5]   ;;  %s33_s15 = sshll.u32 %s116_s1, 4  ;;  %vm24_vm0 = vcmask 261120   ;;  %v23_v0 = vld [vmem:[#allocation2] sm:$0xff]  ;;  %s34_s15 = int_to_ptr.hbm [resolvable:$true] %s33_s15 }
   0x6   :  { %s31_s12 = sshll.u32 %s98_s11, 4  ;;  %25 = vst.msk [vmem:[#allocation5] sm:$0xff] %vm24_vm0, %v23_v0  ;;  %s32_s12 = int_to_ptr.vmem [resolvable:$true] %s31_s12 }
   0x7   :  { %36 = dma.vmem_to_hbm [thread:$0]  %s32_s12, 128, %s34_s15, [#allocation4]  }
   0x8   :  { %95 = dma.done.wait [#allocation4], 128  }
   0x9   :  { %96 = vsyncadd [#allocation4], 4294967168 }
   0xa   :  { %41 = vsyncpa [#allocation3], 1 }
   0xb   :  { %42 = vsyncpa [#allocation4], 1 }

</bundles_post_ra>
